<compile_context>
chip_gen: v7x
topology: tpu7x:2x2x1
jax: 0.10.0
libtpu: 0.0.40
codegen_flags: <defaults>
</compile_context>

<pallas_src>
import jax
import jax.numpy as jnp
from jax.experimental import pallas as pl
from jax.experimental.pallas import tpu as pltpu


def _round_up(n, m):
    return ((n + m - 1) // m) * m


def _ffnn_kernel(x_ref,          # (1, T)   batch on lanes
                 w1_ref, b1_ref, # (64, 1), (64, 1)
                 w3_ref, b3_ref, # (64, 64), (64, 1)
                 w4_ref, b4_ref, # (64, 1), (1, 1)
                 o_ref):         # (1, T)
    x_row = x_ref[...]                                        # (1, T)

    # fc1 + relu: contraction dim K=1 -> VPU broadcast multiply, not MXU.
    h1 = jnp.maximum(w1_ref[...] * x_row + b1_ref[...], 0.0)  # (64, T)

    # tanh branch
    tanh_x = jnp.tanh(h1)                                     # (64, T)

    # fc2 is dead in the original module (result unused) -> not computed.

    # fc3 + relu: the only real matmul, (64,64) @ (64,T), lane-dense output.
    h3 = jnp.dot(w3_ref[...], tanh_x,
                 preferred_element_type=jnp.float32)          # (64, T)
    h3 = jnp.maximum(h3 + b3_ref[...], 0.0)

    # fc4: output dim 1 -> multiply + sublane reduction instead of M=1 matmul.
    out = jnp.sum(h3 * w4_ref[...], axis=0, keepdims=True)    # (1, T)
    o_ref[...] = out + b4_ref[...]


def feedforward_nn(x, params, tile_n=8192):
    """x: (N, 1) float32.  params: PyTorch-layout weights/biases."""
    n = x.shape[0]
    # Lane-dense tile: multiple of 128, capped for small batches.
    tile = min(tile_n, _round_up(max(n, 1), 128))
    n_pad = _round_up(n, tile)

    # Feature-major input: batch goes on the 128-lane axis. Pad tail tile.
    x_t = jnp.zeros((1, n_pad), jnp.float32).at[0, :n].set(x[:, 0])

    # Pre-arrange weights once outside the kernel (no in-kernel transposes).
    w1 = params["w1"].reshape(64, 1)          # (out=64, in=1) column
    b1 = params["b1"].reshape(64, 1)
    w3 = params["w3"]                         # (out=64, in=64), used as W3 @ act
    b3 = params["b3"].reshape(64, 1)
    w4 = params["w4"].reshape(1, 64).T        # (64, 1) column
    b4 = params["b4"].reshape(1, 1)

    grid = (n_pad // tile,)
    row_spec = pl.BlockSpec((1, tile), lambda i: (0, i))

    def resident(shape):
        # Same block every grid step -> stays in VMEM, DMA'd once.
        return pl.BlockSpec(shape, lambda i: (0, 0))

    out_t = pl.pallas_call(
        _ffnn_kernel,
        out_shape=jax.ShapeDtypeStruct((1, n_pad), jnp.float32),
        grid=grid,
        in_specs=[row_spec,
                  resident((64, 1)), resident((64, 1)),
                  resident((64, 64)), resident((64, 1)),
                  resident((64, 1)), resident((1, 1))],
        out_specs=row_spec,
        compiler_params=pltpu.CompilerParams(
            dimension_semantics=("parallel",),
            vmem_limit_bytes=32 << 20),
    )(x_t, w1, b1, w3, b3, w4, b4)

    return out_t[0, :n].reshape(n, 1)


def init_params(key):
    """Deterministic init mimicking nn.Linear's U(-1/sqrt(fan_in), 1/sqrt(fan_in))."""
    def linear(key, out_f, in_f):
        kw, kb = jax.random.split(key)
        bound = 1.0 / (in_f ** 0.5)
        w = jax.random.uniform(kw, (out_f, in_f), jnp.float32, -bound, bound)
        b = jax.random.uniform(kb, (out_f,), jnp.float32, -bound, bound)
        return w, b

    k1, k2, k3, k4 = jax.random.split(key, 4)
    w1, b1 = linear(k1, 64, 1)
    w2, b2 = linear(k2, 64, 64)   # kept for API parity; unused by the output
    w3, b3 = linear(k3, 64, 64)
    w4, b4 = linear(k4, 1, 64)
    return dict(w1=w1, b1=b1, w2=w2, b2=b2, w3=w3, b3=b3, w4=w4, b4=b4)


def reference(x, p):
    h1 = jnp.maximum(x @ p["w1"].T + p["b1"], 0.0)
    tanh_x = jnp.tanh(h1)
    h3 = jnp.maximum(tanh_x @ p["w3"].T + p["b3"], 0.0)
    return h3 @ p["w4"].T + p["b4"]


if __name__ == "__main__":
    key = jax.random.PRNGKey(0)
    kx, kp = jax.random.split(key)

    batch = 8
    x = jax.random.normal(kx, (batch, 1), jnp.float32)
    params = init_params(kp)

    out = feedforward_nn(x, params)
    jax.block_until_ready(out)

    ref = reference(x, params)
    assert out.shape == (batch, 1), out.shape
    assert jnp.allclose(out, ref, atol=1e-5, rtol=1e-5), (out, ref)

    print("KERNEL_OK")
</pallas_src>

<mosaic_0001>
module attributes {stable_mosaic.version = 11 : i64} {
  func.func @_ffnn_kernel(%arg0: i32, %arg1: memref<1x128xf32, #tpu.memory_space<vmem>>, %arg2: memref<64x1xf32, #tpu.memory_space<vmem>>, %arg3: memref<64x1xf32, #tpu.memory_space<vmem>>, %arg4: memref<64x64xf32, #tpu.memory_space<vmem>>, %arg5: memref<64x1xf32, #tpu.memory_space<vmem>>, %arg6: memref<64x1xf32, #tpu.memory_space<vmem>>, %arg7: memref<1x1xf32, #tpu.memory_space<vmem>>, %arg8: memref<1x128xf32, #tpu.memory_space<vmem>>) attributes {dimension_semantics = [#tpu.dimension_semantics<parallel>], iteration_bounds = array<i64: 1>, scalar_prefetch = 0 : i64, scratch_operands = 0 : i64, tpu.core_type = #tpu.core_type<tc>, window_params = [{transform_indices = @transform_0, window_bounds = array<i64: 1, 128>}, {pipeline_mode = #tpu.pipeline_mode<synchronous>, transform_indices = @transform_1, window_bounds = array<i64: 64, 1>}, {pipeline_mode = #tpu.pipeline_mode<synchronous>, transform_indices = @transform_2, window_bounds = array<i64: 64, 1>}, {pipeline_mode = #tpu.pipeline_mode<synchronous>, transform_indices = @transform_3, window_bounds = array<i64: 64, 64>}, {pipeline_mode = #tpu.pipeline_mode<synchronous>, transform_indices = @transform_4, window_bounds = array<i64: 64, 1>}, {pipeline_mode = #tpu.pipeline_mode<synchronous>, transform_indices = @transform_5, window_bounds = array<i64: 64, 1>}, {pipeline_mode = #tpu.pipeline_mode<synchronous>, transform_indices = @transform_6, window_bounds = array<i64: 1, 1>}, {transform_indices = @transform_7, window_bounds = array<i64: 1, 128>}]} {
    %c0 = arith.constant 0 : index
    %c0_0 = arith.constant 0 : index
    %0 = vector.load %arg1[%c0, %c0_0] : memref<1x128xf32, #tpu.memory_space<vmem>>, vector<1x128xf32>
    %c0_1 = arith.constant 0 : index
    %c0_2 = arith.constant 0 : index
    %1 = vector.load %arg2[%c0_1, %c0_2] : memref<64x1xf32, #tpu.memory_space<vmem>>, vector<64x1xf32>
    %2 = vector.broadcast %1 : vector<64x1xf32> to vector<64x128xf32>
    %3 = vector.broadcast %0 : vector<1x128xf32> to vector<64x128xf32>
    %4 = arith.mulf %2, %3 : vector<64x128xf32>
    %c0_3 = arith.constant 0 : index
    %c0_4 = arith.constant 0 : index
    %5 = vector.load %arg3[%c0_3, %c0_4] : memref<64x1xf32, #tpu.memory_space<vmem>>, vector<64x1xf32>
    %6 = vector.broadcast %5 : vector<64x1xf32> to vector<64x128xf32>
    %7 = arith.addf %4, %6 : vector<64x128xf32>
    %cst = arith.constant 0.000000e+00 : f32
    %8 = vector.broadcast %cst : f32 to vector<64x128xf32>
    %9 = arith.maximumf %7, %8 : vector<64x128xf32>
    %10 = math.tanh %9 : vector<64x128xf32>
    %c0_5 = arith.constant 0 : index
    %c0_6 = arith.constant 0 : index
    %11 = vector.load %arg4[%c0_5, %c0_6] : memref<64x64xf32, #tpu.memory_space<vmem>>, vector<64x64xf32>
    %cst_7 = arith.constant dense<0.000000e+00> : vector<64x128xf32>
    %12 = tpu.matmul %11, %10, %cst_7 {dimension_numbers = #tpu.dot_dimension_numbers<[1], [0], [0], [1], [0, 0, 1, 1], [], []>} : vector<64x64xf32>, vector<64x128xf32>, vector<64x128xf32> -> vector<64x128xf32>
    %c0_8 = arith.constant 0 : index
    %c0_9 = arith.constant 0 : index
    %13 = vector.load %arg5[%c0_8, %c0_9] : memref<64x1xf32, #tpu.memory_space<vmem>>, vector<64x1xf32>
    %14 = vector.broadcast %13 : vector<64x1xf32> to vector<64x128xf32>
    %15 = arith.addf %12, %14 : vector<64x128xf32>
    %cst_10 = arith.constant 0.000000e+00 : f32
    %16 = vector.broadcast %cst_10 : f32 to vector<64x128xf32>
    %17 = arith.maximumf %15, %16 : vector<64x128xf32>
    %c0_11 = arith.constant 0 : index
    %c0_12 = arith.constant 0 : index
    %18 = vector.load %arg6[%c0_11, %c0_12] : memref<64x1xf32, #tpu.memory_space<vmem>>, vector<64x1xf32>
    %19 = vector.broadcast %18 : vector<64x1xf32> to vector<64x128xf32>
    %20 = arith.mulf %17, %19 : vector<64x128xf32>
    %cst_13 = arith.constant dense<0.000000e+00> : vector<128xf32>
    %21 = vector.multi_reduction <add>, %20, %cst_13 [0] : vector<64x128xf32> to vector<128xf32>
    %22 = vector.shape_cast %21 : vector<128xf32> to vector<1x128xf32>
    %c0_14 = arith.constant 0 : index
    %c0_15 = arith.constant 0 : index
    %23 = vector.load %arg7[%c0_14, %c0_15] : memref<1x1xf32, #tpu.memory_space<vmem>>, vector<1x1xf32>
    %24 = vector.broadcast %23 : vector<1x1xf32> to vector<1x128xf32>
    %25 = arith.addf %22, %24 : vector<1x128xf32>
    %c0_16 = arith.constant 0 : index
    %c0_17 = arith.constant 0 : index
    %26 = vector.load %arg8[%c0_16, %c0_17] : memref<1x128xf32, #tpu.memory_space<vmem>>, vector<1x128xf32>
    tpu.vector_store %arg8[%c0_16, %c0_17], %25 {strides = array<i32>} : memref<1x128xf32, #tpu.memory_space<vmem>>, vector<1x128xf32>,
    return
  }
  func.func @transform_0(%arg0: i32) -> (i32, i32) {
    %c0_i32 = arith.constant 0 : i32
    %c0_i32_0 = arith.constant 0 : i32
    return %c0_i32, %arg0 : i32, i32
  }
  func.func @transform_1(%arg0: i32) -> (i32, i32) {
    %c0_i32 = arith.constant 0 : i32
    %c0_i32_0 = arith.constant 0 : i32
    %c0_i32_1 = arith.constant 0 : i32
    return %c0_i32, %c0_i32_0 : i32, i32
  }
  func.func @transform_2(%arg0: i32) -> (i32, i32) {
    %c0_i32 = arith.constant 0 : i32
    %c0_i32_0 = arith.constant 0 : i32
    %c0_i32_1 = arith.constant 0 : i32
    return %c0_i32, %c0_i32_0 : i32, i32
  }
  func.func @transform_3(%arg0: i32) -> (i32, i32) {
    %c0_i32 = arith.constant 0 : i32
    %c0_i32_0 = arith.constant 0 : i32
    %c0_i32_1 = arith.constant 0 : i32
    return %c0_i32, %c0_i32_0 : i32, i32
  }
  func.func @transform_4(%arg0: i32) -> (i32, i32) {
    %c0_i32 = arith.constant 0 : i32
    %c0_i32_0 = arith.constant 0 : i32
    %c0_i32_1 = arith.constant 0 : i32
    return %c0_i32, %c0_i32_0 : i32, i32
  }
  func.func @transform_5(%arg0: i32) -> (i32, i32) {
    %c0_i32 = arith.constant 0 : i32
    %c0_i32_0 = arith.constant 0 : i32
    %c0_i32_1 = arith.constant 0 : i32
    return %c0_i32, %c0_i32_0 : i32, i32
  }
  func.func @transform_6(%arg0: i32) -> (i32, i32) {
    %c0_i32 = arith.constant 0 : i32
    %c0_i32_0 = arith.constant 0 : i32
    %c0_i32_1 = arith.constant 0 : i32
    return %c0_i32, %c0_i32_0 : i32, i32
  }
  func.func @transform_7(%arg0: i32) -> (i32, i32) {
    %c0_i32 = arith.constant 0 : i32
    %c0_i32_0 = arith.constant 0 : i32
    return %c0_i32, %arg0 : i32, i32
  }
}

</mosaic_0001>

<bundles_post_ra>
// kernel: tpu_custom_call.1
= control target key start
LH: loop header
LB: loop body
LE: loop exit
PB: predicated region body
PF: predicated region fallthrough
CT: control target
= control target key end

     0   :  { %s762_s0 = inlined_call_operand.vmem [shape: f32[1,128], index: 0, kind: input, shape index: {}]   ;;  %s763_s1 = inlined_call_operand.vmem [shape: f32[64,1], index: 1, kind: input, shape index: {}]   ;;  %s764_s2 = inlined_call_operand.vmem [shape: f32[64,1], index: 2, kind: input, shape index: {}]   ;;  %s765_s3 = inlined_call_operand.vmem [shape: f32[64,64], index: 3, kind: input, shape index: {}]   ;;  %s766_s4 = inlined_call_operand.vmem [shape: f32[64,1], index: 4, kind: input, shape index: {}]   ;;  %s767_s5 = inlined_call_operand.vmem [shape: f32[64,1], index: 5, kind: input, shape index: {}]   ;;  %s768_s6 = inlined_call_operand.<no memory space> [shape: f32[1,1], index: 6, kind: input, shape index: {}]   ;;  %s769_s7 = inlined_call_operand.hbm [shape: f32[1,128], index: 7, kind: output, shape index: {}]  }
   0x1   :  { %v12_v0 = vstv %s768_s6 }
   0x2   :  { %13 = vst [vmem:[#allocation2] sm:$0x1] %v12_v0 }
   0x3   :  { %v92_v1 = vld [vmem:[%s764_s2] sm:$0xff]  ;;  %v574_v3 = vmov 0   ;;  %v93_v4 = vld [vmem:[%s764_s2 + $0x8] sm:$0xff]  ;;  %v33_v6 = vld [vmem:[%s763_s1 + $0x18] sm:$0xff] }
   0x4   :  { %v30_v2 = vld [vmem:[%s763_s1] sm:$0xff]  ;;  %533 = vset.pattern.permute.xlu1 %v574_v3  ;;  %532 = vset.pattern.permute.xlu0 %v574_v3  ;;  %v31_v5 = vld [vmem:[%s763_s1 + $0x8] sm:$0xff]  ;;  %v32_v7 = vld [vmem:[%s763_s1 + $0x10] sm:$0xff] }
   0x5   :  { %102 = vperm.xlu1 %533, %v92_v1   ;;  %40 = vperm.xlu0 %532, %v30_v2   ;;  %v95_v8 = vld [vmem:[%s764_s2 + $0x18] sm:$0xff]  ;;  %v94_v9 = vld [vmem:[%s764_s2 + $0x10] sm:$0xff] }
   0x9   :  { %107 = vperm.xlu1 %533, %v93_v4   ;;  %45 = vperm.xlu0 %532, %v31_v5  }
   0xd   :  { %55 = vperm.xlu1 %533, %v33_v6   ;;  %50 = vperm.xlu0 %532, %v32_v7  }
   0xe   :  { %14 = vsyncpa [#allocation4], 0  ;;  %v35_v10 = vld [vmem:[%s763_s1 + $0x28] sm:$0xff]  ;;  %v34_v11 = vld [vmem:[%s763_s1 + $0x20] sm:$0xff]  ;;  %vm220_vm0 = vcmask 523264  }
   0xf   :  { %v97_v12 = vld [vmem:[%s764_s2 + $0x28] sm:$0xff]  ;;  %v96_v13 = vld [vmem:[%s764_s2 + $0x20] sm:$0xff]  ;;  %v37_v14 = vld [vmem:[%s763_s1 + $0x38] sm:$0xff] }
  0x10   :  { %v36_v15 = vld [vmem:[%s763_s1 + $0x30] sm:$0xff]  ;;  %v99_v16 = vld [vmem:[%s764_s2 + $0x38] sm:$0xff]  ;;  %v173_v18 = vld [vmem:[%s766_s4 + $0x8] sm:$0xff] }
  0x11   :  { %117 = vperm.xlu1 %533, %v95_v8   ;;  %112 = vperm.xlu0 %532, %v94_v9   ;;  %v98_v17 = vld [vmem:[%s764_s2 + $0x30] sm:$0xff]  ;;  %v172_v19 = vld [vmem:[%s766_s4] sm:$0xff]  ;;  %v175_v20 = vld [vmem:[%s766_s4 + $0x18] sm:$0xff] }
  0x12   :  { %v174_v21 = vld [vmem:[%s766_s4 + $0x10] sm:$0xff]  ;;  %v359_v22 = vld [vmem:[%s767_s5 + $0x8] sm:$0xff]  ;;  %v358_v23 = vld [vmem:[%s767_s5] sm:$0xff] }
  0x13   :  { %v360_v24 = vld [vmem:[%s767_s5 + $0x10] sm:$0xff]  ;;  %v176_v25 = vld [vmem:[%s766_s4 + $0x20] sm:$0xff]  ;;  %v361_v26 = vld [vmem:[%s767_s5 + $0x18] sm:$0xff] }
  0x14   :  { %v177_v27 = vld [vmem:[%s766_s4 + $0x28] sm:$0xff]  ;;  %v164_v28 = vld [vmem:[%s765_s3] sm:$0xff]  ;;  %v178_v31 = vld [vmem:[%s766_s4 + $0x30] sm:$0xff] }
  0x15   :  { %65 = vperm.xlu1 %533, %v35_v10   ;;  %60 = vperm.xlu0 %532, %v34_v11   ;;  %v168_v29 = vld [vmem:[%s765_s3 + $0x20] sm:$0xff]  ;;  %v363_v32 = vld [vmem:[%s767_s5 + $0x28] sm:$0xff]  ;;  %v179_v33 = vld [vmem:[%s766_s4 + $0x38] sm:$0xff] }
  0x16   :  { %v362_v30 = vld [vmem:[%s767_s5 + $0x20] sm:$0xff]  ;;  %494 = vmatprep.mubr.msk.f32.mxu0 %vm220_vm0, %v164_v28  ;;  %500 = vmatprep.mubr.msk.f32.mxu1 %vm220_vm0, %v168_v29  ;;  %v365_v34 = vld [vmem:[%s767_s5 + $0x38] sm:$0xff]  ;;  %v364_v35 = vld [vmem:[%s767_s5 + $0x30] sm:$0xff] }
  0x17   :  { %v427_v36 = vld [vmem:[#allocation2] sm:$0x1]  ;;  %v166_v28 = vld [vmem:[%s765_s3 + $0x10] sm:$0xff] }
  0x18   :  { %v453_v37 = vld [vmem:[%s762_s0] ss:$0 sm:$0xff]  ;;  %v170_v29 = vld [vmem:[%s765_s3 + $0x30] sm:$0xff] }
  0x19   :  { %127 = vperm.xlu1 %533, %v97_v12   ;;  %122 = vperm.xlu0 %532, %v96_v13  }
  0x1d   :  { %75 = vperm.xlu1 %533, %v37_v14   ;;  %70 = vperm.xlu0 %532, %v36_v15  }
  0x21   :  { %137 = vperm.xlu1 %533, %v99_v16   ;;  %132 = vperm.xlu0 %532, %v98_v17  }
  0x25   :  { %187 = vperm.xlu1 %533, %v173_v18   ;;  %182 = vperm.xlu0 %532, %v172_v19  }
  0x29   :  { %197 = vperm.xlu1 %533, %v175_v20   ;;  %192 = vperm.xlu0 %532, %v174_v21  }
  0x2d   :  { %373 = vperm.xlu1 %533, %v359_v22   ;;  %368 = vperm.xlu0 %532, %v358_v23  }
  0x31   :  { %378 = vperm.xlu1 %533, %v360_v24   ;;  %202 = vperm.xlu0 %532, %v176_v25  }
  0x35   :  { %383 = vperm.xlu1 %533, %v361_v26   ;;  %207 = vperm.xlu0 %532, %v177_v27   ;;  %v165_v26 = vld [vmem:[%s765_s3 + $0x8] sm:$0xff] }
  0x36   :  { %v169_v27 = vld [vmem:[%s765_s3 + $0x28] sm:$0xff] }
  0x39   :  { %388 = vperm.xlu1 %533, %v362_v30   ;;  %212 = vperm.xlu0 %532, %v178_v31   ;;  %v167_v30 = vld [vmem:[%s765_s3 + $0x18] sm:$0xff] }
  0x3a   :  { %v171_v31 = vld [vmem:[%s765_s3 + $0x38] sm:$0xff]  ;;  %s575_s3 = smov [#allocation3]  }
  0x3b   :  { %s445_s29 = sshll.u32 %s575_s3, 4  ;;  %s446_s29 = int_to_ptr.vmem [resolvable:$true] %s445_s29 }
  0x3c   :  { %s550_s30 = scalar_lea.vmem %s446_s29, 16  ;;  %s554_s8 = scalar_lea.vmem %s446_s29, 32 }
  0x3d   :  { %393 = vperm.xlu1 %533, %v363_v32   ;;  %217 = vperm.xlu0 %532, %v179_v33   ;;  %p551_p0 = scmp.ne.s32.totalorder %s446_s29, %s550_s30  ;;  %p555_p1 = scmp.lt.s32.totalorder %s446_s29, %s446_s29 }
  0x3e   :  { %p556_p2 = scmp.lt.s32.totalorder %s554_s8, %s550_s30 }
  0x40   :  { %p557_p3 = por %p556_p2, %p555_p1 }
  0x41   :  { %403 = vperm.xlu1 %533, %v365_v34   ;;  %398 = vperm.xlu0 %532, %v364_v35  }
  0x42   :  { %p558_p4 = pnand %p557_p3, %p551_p0 }
  0x45   :  { %430 = vperm.xlu0 %532, %v427_v36  }
  0x84   :  { %v103_v38 = vpop.permute.xlu1 %102  ;;  %v41_v39 = vpop.permute.xlu0 %40 }
  0x85   :  { %v84_v40 = vmul.f32 %v453_v37, %v41_v39 }
  0x87   :  { %v140_v41 = vadd.f32 %v103_v38, %v84_v40 }
  0x88   :  { %v108_v42 = vpop.permute.xlu1 %107  ;;  %v46_v43 = vpop.permute.xlu0 %45 }
  0x89   :  { %v85_v44 = vmul.f32 %v453_v37, %v46_v43  ;;  %v148_v45 = vmax.f32 %v140_v41, 0.0 }
  0x8b   :  { %v141_v46 = vadd.f32 %v108_v42, %v85_v44  ;;  %534 = vtanh.f32 %v148_v45 }
  0x8c   :  { %v56_v47 = vpop.permute.xlu1 %55  ;;  %v51_v48 = vpop.permute.xlu0 %50 }
  0x8d   :  { %v149_v49 = vmax.f32 %v141_v46, 0.0  ;;  %v87_v50 = vmul.f32 %v453_v37, %v56_v47  ;;  %v86_v51 = vmul.f32 %v453_v37, %v51_v48 }
  0x8f   :  { %536 = vtanh.f32 %v149_v49 }
  0x90   :  { %v118_v52 = vpop.permute.xlu1 %117  ;;  %v113_v53 = vpop.permute.xlu0 %112 }
  0x91   :  { %v143_v54 = vadd.f32 %v118_v52, %v87_v50  ;;  %v142_v55 = vadd.f32 %v113_v53, %v86_v51 }
  0x93   :  { %v151_v56 = vmax.f32 %v143_v54, 0.0  ;;  %v150_v57 = vmax.f32 %v142_v55, 0.0 }
  0x94   :  { %v66_v58 = vpop.permute.xlu1 %65  ;;  %v61_v59 = vpop.permute.xlu0 %60 }
  0x95   :  { %538 = vtanh.f32 %v151_v56  ;;  %v89_v60 = vmul.f32 %v453_v37, %v66_v58  ;;  %v88_v61 = vmul.f32 %v453_v37, %v61_v59  ;;  %v535_v62 = vpop.eup %534 }
  0x96   :  { %540 = vtanh.f32 %v150_v57 }
  0x98   :  { %v128_v63 = vpop.permute.xlu1 %127  ;;  %v123_v0 = vpop.permute.xlu0 %122 }
  0x99   :  { %v537_v1 = vpop.eup %536  ;;  %v145_v2 = vadd.f32 %v128_v63, %v89_v60  ;;  %v144_v3 = vadd.f32 %v123_v0, %v88_v61 }
  0x9a   :  { %v506_v4 = vpack.c.bf16 %v537_v1, %v535_v62 }
  0x9b   :  { %v153_v5 = vmax.f32 %v145_v2, 0.0  ;;  %v152_v6 = vmax.f32 %v144_v3, 0.0 }
  0x9c   :  { %v76_v7 = vpop.permute.xlu1 %75  ;;  %v71_v8 = vpop.permute.xlu0 %70  ;;  %507 = vmatprep.subr.bf16.mxu0 %v506_v4  ;;  %522 = vmatprep.subr.bf16.mxu1 %v506_v4 }
  0x9d   :  { %542 = vtanh.f32 %v153_v5  ;;  %509 = vmatpush3.bf16.msra.mxu0 %v506_v4  ;;  %526 = vmatpush3.bf16.msra.mxu1 %v506_v4  ;;  %v91_v10 = vmul.f32 %v453_v37, %v76_v7  ;;  %v90_v11 = vmul.f32 %v453_v37, %v71_v8 }
  0x9e   :  { %544 = vtanh.f32 %v152_v6 }
  0x9f   :  { %v539_v9 = vpop.eup %538 }
  0xa0   :  { %v541_v12 = vpop.eup %540  ;;  %v138_v13 = vpop.permute.xlu1 %137 }
  0xa1   :  { %v133_v14 = vpop.permute.xlu0 %132  ;;  %v147_v15 = vadd.f32 %v138_v13, %v91_v10  ;;  %v510_v17 = vpack.c.bf16 %v539_v9, %v541_v12 }
  0xa2   :  { %v146_v16 = vadd.f32 %v133_v14, %v90_v11 }
  0xa3   :  { %v155_v18 = vmax.f32 %v147_v15, 0.0  ;;  %511 = vmatprep.subr.bf16.mxu0 %v510_v17  ;;  %523 = vmatprep.subr.bf16.mxu1 %v510_v17 }
  0xa4   :  { %v154_v19 = vmax.f32 %v146_v16, 0.0  ;;  %513 = vmatpush3.bf16.msra.mxu0 %v510_v17  ;;  %527 = vmatpush3.bf16.msra.mxu1 %v510_v17  ;;  %v188_v33 = vpop.permute.xlu1 %187 }
  0xa5   :  { %546 = vtanh.f32 %v155_v18  ;;  %v183_v32 = vpop.permute.xlu0 %182 }
  0xa6   :  { %548 = vtanh.f32 %v154_v19 }
  0xa7   :  { %v543_v20 = vpop.eup %542 }
  0xa8   :  { %v545_v21 = vpop.eup %544  ;;  %v198_v35 = vpop.permute.xlu1 %197 }
  0xa9   :  { %v514_v22 = vpack.c.bf16 %v543_v20, %v545_v21  ;;  %v193_v34 = vpop.permute.xlu0 %192 }
  0xab   :  { %515 = vmatprep.subr.bf16.mxu0 %v514_v22  ;;  %524 = vmatprep.subr.bf16.mxu1 %v514_v22 }
  0xac   :  { %517 = vmatpush3.bf16.msra.mxu0 %v514_v22  ;;  %528 = vmatpush3.bf16.msra.mxu1 %v514_v22  ;;  %v374_v37 = vpop.permute.xlu1 %373  ;;  %v433_v22 = vlaneseq }
  0xad   :  { %v369_v36 = vpop.permute.xlu0 %368 }
  0xaf   :  { %v547_v23 = vpop.eup %546 }
  0xb0   :  { %v549_v24 = vpop.eup %548  ;;  %v379_v39 = vpop.permute.xlu1 %378 }
  0xb1   :  { %v518_v25 = vpack.c.bf16 %v547_v23, %v549_v24  ;;  %v203_v38 = vpop.permute.xlu0 %202 }
  0xb3   :  { %519 = vmatprep.subr.bf16.mxu0 %v518_v25  ;;  %525 = vmatprep.subr.bf16.mxu1 %v518_v25 }
  0xb4   :  { %521 = vmatpush3.bf16.msra.mxu0 %v518_v25  ;;  %529 = vmatpush3.bf16.msra.mxu1 %v518_v25  ;;  %v384_v41 = vpop.permute.xlu1 %383  ;;  %v434_v25 = vshrl.u32 %v433_v22, 7 }
  0xb5   :  { %v208_v40 = vpop.permute.xlu0 %207 }
  0xb7   :  { %495 = vmatmul.mubr.msk.f32.vlgmr.msra.gmra.mrb[0].mxu0 %vm220_vm0, %v165_v26  ;;  %501 = vmatmul.mubr.msk.f32.vlgmr.msra.gmra.mrb[0].mxu1 %vm220_vm0, %v169_v27 }
  0xb8   :  { %497 = vmatprep.mubr.msk.f32.mxu0 %vm220_vm0, %v166_v28  ;;  %503 = vmatprep.mubr.msk.f32.mxu1 %vm220_vm0, %v170_v29  ;;  %v389_v60 = vpop.permute.xlu1 %388  ;;  %v435_v28 = vsub.s32 0, %v434_v25 }
  0xb9   :  { %v213_v48 = vpop.permute.xlu0 %212 }
  0xbb   :  { %498 = vmatmul.mubr.msk.f32.gmra.mrb[2].mxu0 %vm220_vm0, %v167_v30  ;;  %504 = vmatmul.mubr.msk.f32.gmra.mrb[2].mxu1 %vm220_vm0, %v171_v31 }
  0xbc   :  { %v394_v9 = vpop.permute.xlu1 %393 }
  0xbd   :  { %v218_v4 = vpop.permute.xlu0 %217 }
  0xc0   :  { %v404_v19 = vpop.permute.xlu1 %403 }
  0xc1   :  { %v399_v16 = vpop.permute.xlu0 %398 }
  0xc5   :  { %v431_v30 = vpop.permute.xlu0 %430 }
 0x18a   :  { %v496_v42 = vpop.f32.mrb[0].mxu0  ;;  %v502_v43 = vpop.f32.mrb[0].mxu1 }
 0x18b   :  { %v317_v44 = vadd.f32 %v496_v42, %v188_v33  ;;  %v311_v45 = vpop.f32.mrb[1].mxu0  ;;  %v331_v46 = vpop.f32.mrb[1].mxu1  ;;  %v337_v61 = vadd.f32 %v502_v43, %v208_v40 }
 0x18c   :  { %v312_v47 = vadd.f32 %v311_v45, %v183_v32  ;;  %v332_v58 = vadd.f32 %v331_v46, %v203_v38  ;;  %v436_v32 = vrot.slane %v431_v30, %v435_v28 }
 0x18d   :  { %v351_v49 = vmax.f32 %v317_v44, 0.0  ;;  %v355_v5 = vmax.f32 %v337_v61, 0.0 }
 0x18e   :  { %v350_v50 = vmax.f32 %v312_v47, 0.0  ;;  %v499_v51 = vpop.f32.mrb[2].mxu0  ;;  %v505_v52 = vpop.f32.mrb[2].mxu1  ;;  %v354_v1 = vmax.f32 %v332_v58, 0.0 }
 0x18f   :  { %v407_v53 = vmul.f32 %v374_v37, %v351_v49  ;;  %v327_v54 = vadd.f32 %v499_v51, %v198_v35  ;;  %v321_v55 = vpop.f32.mrb[3].mxu0  ;;  %v341_v56 = vpop.f32.mrb[3].mxu1  ;;  %v347_v7 = vadd.f32 %v505_v52, %v218_v4  ;;  %v411_v13 = vmul.f32 %v394_v9, %v355_v5 }
 0x190   :  { %v406_v57 = vmul.f32 %v369_v36, %v350_v50  ;;  %v322_v59 = vadd.f32 %v321_v55, %v193_v34  ;;  %v342_v3 = vadd.f32 %v341_v56, %v213_v48  ;;  %v410_v10 = vmul.f32 %v389_v60, %v354_v1 }
 0x191   :  { %v353_v63 = vmax.f32 %v327_v54, 0.0  ;;  %v357_v14 = vmax.f32 %v347_v7, 0.0 }
 0x192   :  { %v414_v62 = vadd.f32 %v407_v53, %v406_v57  ;;  %v352_v0 = vmax.f32 %v322_v59, 0.0  ;;  %v356_v12 = vmax.f32 %v342_v3, 0.0 }
 0x193   :  { %v409_v6 = vmul.f32 %v384_v41, %v353_v63  ;;  %v413_v20 = vmul.f32 %v404_v19, %v357_v14 }
 0x194   :  { %v408_v2 = vmul.f32 %v379_v39, %v352_v0  ;;  %v412_v17 = vmul.f32 %v399_v16, %v356_v12 }
 0x196   :  { %v415_v8 = vadd.f32 %v414_v62, %v408_v2 }
 0x198   :  { %v416_v11 = vadd.f32 %v415_v8, %v409_v6 }
 0x19a   :  { %v417_v15 = vadd.f32 %v416_v11, %v410_v10 }
 0x19c   :  { %v418_v18 = vadd.f32 %v417_v15, %v411_v13 }
 0x19e   :  { %v419_v21 = vadd.f32 %v418_v18, %v412_v17 }
 0x1a0   :  { %v420_v23 = vadd.f32 %v419_v21, %v413_v20 }
 0x1a2   :  { %v421_v24 = vrot.slane %v420_v23, 4 }
 0x1a4   :  { %v422_v26 = vadd.f32 %v421_v24, %v420_v23 }
 0x1a6   :  { %v423_v27 = vrot.slane %v422_v26, 2 }
 0x1a8   :  { %v424_v29 = vadd.f32 %v423_v27, %v422_v26 }
 0x1aa   :  { %v425_v31 = vrot.slane %v424_v29, 1 }
 0x1ac   :  { %v426_v33 = vadd.f32 %v425_v31, %v424_v29 }
 0x1ae   :  { %v437_v34 = vadd.f32 %v436_v32, %v426_v33 }
 0x1b0   :  { %438 = vst [vmem:[#allocation3] sm:$0x1] %v437_v34 }
 0x1b1   :  { %561 = shalt.err (!%p558_p4)
}
 0x1b2   :  { %s562_s10 = scalar_lea.hbm %s769_s7, 16 }
 0x1b3   :  { %p563_p5 = scmp.ne.s32.totalorder %s769_s7, %s562_s10  ;;  %p566_p6 = scmp.lt.u32.totalorder %s562_s10, %s769_s7 }
 0x1b5   :  { %p568_p7 = pnand %p566_p6, %p563_p5 }
 0x1b7   :  { %571 = shalt.err (!%p568_p7)
}
 0x1b8   :  { %448 = dma.vmem_to_hbm [thread:$0]  %s446_s29, 16, %s769_s7, [#allocation4]  }
 0x1b9   :  { %572 = dma.done.wait [#allocation4], 16  }
 0x1ba   :  { %573 = vsyncadd [#allocation4], 4294967280 }
 0x1bb   :  { %452 = vsyncpa [#allocation4], 1 }

</bundles_post_ra>
